<compile_context>
chip_gen: v6e
topology: v6e:2x2x1
jax: 0.10.0
libtpu: 0.0.40
codegen_flags: <defaults>
</compile_context>

<pallas_src>
import functools

import jax
import jax.numpy as jnp
from jax.experimental import pallas as pl
from jax.experimental.pallas import tpu as pltpu


def _vae_kernel(xs_ref, xp_ref, we_ref, wd_ref,
                rs_ref, rp_ref, ls_ref, lp_ref,
                *, input_size, latent_size):
    """Both VAE paths in one invocation (no grid).

    xs_ref / xp_ref : [B, in]          scalar / pairwise inputs (raw widths)
    we_ref          : [2, in+1, lat]   encoder weights; bias in row `in`
    wd_ref          : [2, lat+1, in]   decoder weights; bias in row `lat`
    rs_ref / rp_ref : [B, in]          reconstructions (real width)
    ls_ref / lp_ref : [B, lat]         latents (real width)
    """
    we = we_ref[...]          # [2, in+1, lat]  (tiny: a few KiB)
    wd = wd_ref[...]          # [2, lat+1, in]
    x_refs = (xs_ref, xp_ref)
    lat_refs = (ls_ref, lp_ref)
    rec_refs = (rs_ref, rp_ref)

    for p in range(2):        # static unroll over the two independent paths
        x = x_refs[p][...]
        # Encoder: one MXU dot (f32 accumulate) + broadcast bias add (VPU).
        h = jnp.dot(x, we[p, :input_size, :],
                    preferred_element_type=jnp.float32)
        h = h + we[p, input_size:input_size + 1, :]
        lat_refs[p][...] = h.astype(lat_refs[p].dtype)
        # Decoder: chained off the f32 `h` (identical to two-stage for f32).
        r = jnp.dot(h, wd[p, :latent_size, :],
                    preferred_element_type=jnp.float32)
        r = r + wd[p, latent_size:latent_size + 1, :]
        rec_refs[p][...] = r.astype(rec_refs[p].dtype)


def pack_vae_params(params):
    """One-time packing (param-setup time, not per forward).

    Appends each bias as an extra trailing row of its weight and stacks the
    two paths, so the kernel takes only two weight operands:
      w_enc: [2, in+1, lat]   (row `in`  = encoder bias)
      w_dec: [2, lat+1, in]   (row `lat` = decoder bias)
    """
    def pack(w, b):
        return jnp.concatenate([w, jnp.reshape(b, (1, -1))], axis=0)

    w_enc = jnp.stack([
        pack(params["enc_scalar_w"], params["enc_scalar_b"]),
        pack(params["enc_pairwise_w"], params["enc_pairwise_b"]),
    ])
    w_dec = jnp.stack([
        pack(params["dec_scalar_w"], params["dec_scalar_b"]),
        pack(params["dec_pairwise_w"], params["dec_pairwise_b"]),
    ])
    return w_enc, w_dec


@functools.partial(jax.jit, static_argnames=("input_size", "latent_size"))
def vae_forward(scalar_input, pairwise_input, w_enc, w_dec, *,
                input_size, latent_size):
    """Matches VAE.forward: returns
    (reconstructed_scalar, reconstructed_pairwise, scalar_latent, pairwise_latent)."""
    batch = scalar_input.shape[0]
    dtype = scalar_input.dtype

    kernel = functools.partial(_vae_kernel, input_size=input_size,
                               latent_size=latent_size)
    vmem = pl.BlockSpec(memory_space=pltpu.MemorySpace.VMEM)  # whole array in VMEM

    rs, rp, ls, lp = pl.pallas_call(
        kernel,
        out_shape=(
            jax.ShapeDtypeStruct((batch, input_size), dtype),   # recon scalar
            jax.ShapeDtypeStruct((batch, input_size), dtype),   # recon pairwise
            jax.ShapeDtypeStruct((batch, latent_size), dtype),  # scalar latent
            jax.ShapeDtypeStruct((batch, latent_size), dtype),  # pairwise latent
        ),
        in_specs=[vmem, vmem, vmem, vmem],
        out_specs=(vmem, vmem, vmem, vmem),
    )(scalar_input, pairwise_input, w_enc, w_dec)
    return rs, rp, ls, lp


def init_linear(key, in_features, out_features, dtype=jnp.float32):
    """PyTorch-style nn.Linear init: U(-1/sqrt(in), 1/sqrt(in)).

    Weight returned pre-transposed to [in_features, out_features];
    bias as [out_features]."""
    kw, kb = jax.random.split(key)
    bound = 1.0 / jnp.sqrt(jnp.asarray(in_features, dtype))
    w = jax.random.uniform(kw, (in_features, out_features), dtype,
                           minval=-bound, maxval=bound)
    b = jax.random.uniform(kb, (out_features,), dtype,
                           minval=-bound, maxval=bound)
    return w, b


if __name__ == "__main__":
    input_size = 32
    latent_size = 16
    batch = 8

    root = jax.random.PRNGKey(0)
    k_es, k_ep, k_ds, k_dp, k_x1, k_x2 = jax.random.split(root, 6)

    enc_scalar_w, enc_scalar_b = init_linear(k_es, input_size, latent_size)
    enc_pairwise_w, enc_pairwise_b = init_linear(k_ep, input_size, latent_size)
    dec_scalar_w, dec_scalar_b = init_linear(k_ds, latent_size, input_size)
    dec_pairwise_w, dec_pairwise_b = init_linear(k_dp, latent_size, input_size)

    params = dict(
        enc_scalar_w=enc_scalar_w, enc_scalar_b=enc_scalar_b,
        enc_pairwise_w=enc_pairwise_w, enc_pairwise_b=enc_pairwise_b,
        dec_scalar_w=dec_scalar_w, dec_scalar_b=dec_scalar_b,
        dec_pairwise_w=dec_pairwise_w, dec_pairwise_b=dec_pairwise_b,
    )

    # One-time weight packing (bias folded as an extra row, paths stacked).
    w_enc, w_dec = pack_vae_params(params)

    scalar_input = jax.random.normal(k_x1, (batch, input_size), jnp.float32)
    pairwise_input = jax.random.normal(k_x2, (batch, input_size), jnp.float32)

    outs = vae_forward(scalar_input, pairwise_input, w_enc, w_dec,
                       input_size=input_size, latent_size=latent_size)
    outs = jax.block_until_ready(outs)
    recon_scalar, recon_pairwise, scalar_latent, pairwise_latent = outs

    # Pure-JAX reference check (same math, no Pallas).
    ref_slat = scalar_input @ enc_scalar_w + enc_scalar_b
    ref_plat = pairwise_input @ enc_pairwise_w + enc_pairwise_b
    ref_rs = ref_slat @ dec_scalar_w + dec_scalar_b
    ref_rp = ref_plat @ dec_pairwise_w + dec_pairwise_b

    assert recon_scalar.shape == (batch, input_size)
    assert recon_pairwise.shape == (batch, input_size)
    assert scalar_latent.shape == (batch, latent_size)
    assert pairwise_latent.shape == (batch, latent_size)
    assert jnp.allclose(scalar_latent, ref_slat, atol=1e-5)
    assert jnp.allclose(pairwise_latent, ref_plat, atol=1e-5)
    assert jnp.allclose(recon_scalar, ref_rs, atol=1e-5)
    assert jnp.allclose(recon_pairwise, ref_rp, atol=1e-5)

    print("KERNEL_OK")
</pallas_src>

<mosaic_0001>
module attributes {stable_mosaic.version = 11 : i64} {
  func.func @_vae_kernel(%arg0: memref<8x32xf32, #tpu.memory_space<vmem>>, %arg1: memref<8x32xf32, #tpu.memory_space<vmem>>, %arg2: memref<2x33x16xf32, #tpu.memory_space<vmem>>, %arg3: memref<2x17x32xf32, #tpu.memory_space<vmem>>, %arg4: memref<8x32xf32, #tpu.memory_space<vmem>>, %arg5: memref<8x32xf32, #tpu.memory_space<vmem>>, %arg6: memref<8x16xf32, #tpu.memory_space<vmem>>, %arg7: memref<8x16xf32, #tpu.memory_space<vmem>>) attributes {dimension_semantics = [], scalar_prefetch = 0 : i64, scratch_operands = 0 : i64, tpu.core_type = #tpu.core_type<tc>} {
    %c0 = arith.constant 0 : index
    %c0_0 = arith.constant 0 : index
    %c0_1 = arith.constant 0 : index
    %0 = vector.load %arg2[%c0, %c0_0, %c0_1] : memref<2x33x16xf32, #tpu.memory_space<vmem>>, vector<2x33x16xf32>
    %c0_2 = arith.constant 0 : index
    %c0_3 = arith.constant 0 : index
    %c0_4 = arith.constant 0 : index
    %1 = vector.load %arg3[%c0_2, %c0_3, %c0_4] : memref<2x17x32xf32, #tpu.memory_space<vmem>>, vector<2x17x32xf32>
    %c0_5 = arith.constant 0 : index
    %c0_6 = arith.constant 0 : index
    %2 = vector.load %arg0[%c0_5, %c0_6] : memref<8x32xf32, #tpu.memory_space<vmem>>, vector<8x32xf32>
    %3 = vector.extract_strided_slice %0 {offsets = [0, 0, 0], sizes = [1, 32, 16], strides = [1, 1, 1]} : vector<2x33x16xf32> to vector<1x32x16xf32>
    %4 = vector.shape_cast %3 : vector<1x32x16xf32> to vector<32x16xf32>
    %cst = arith.constant dense<0.000000e+00> : vector<8x16xf32>
    %5 = tpu.matmul %2, %4, %cst {dimension_numbers = #tpu.dot_dimension_numbers<[1], [0], [0], [1], [0, 0, 1, 1], [], []>} : vector<8x32xf32>, vector<32x16xf32>, vector<8x16xf32> -> vector<8x16xf32>
    %6 = vector.extract_strided_slice %0 {offsets = [0, 32, 0], sizes = [1, 1, 16], strides = [1, 1, 1]} : vector<2x33x16xf32> to vector<1x1x16xf32>
    %7 = vector.shape_cast %6 : vector<1x1x16xf32> to vector<1x16xf32>
    %8 = vector.broadcast %7 : vector<1x16xf32> to vector<8x16xf32>
    %9 = arith.addf %5, %8 : vector<8x16xf32>
    %c0_7 = arith.constant 0 : index
    %c0_8 = arith.constant 0 : index
    %10 = vector.load %arg6[%c0_7, %c0_8] : memref<8x16xf32, #tpu.memory_space<vmem>>, vector<8x16xf32>
    tpu.vector_store %arg6[%c0_7, %c0_8], %9 {strides = array<i32>} : memref<8x16xf32, #tpu.memory_space<vmem>>, vector<8x16xf32>,
    %11 = vector.extract_strided_slice %1 {offsets = [0, 0, 0], sizes = [1, 16, 32], strides = [1, 1, 1]} : vector<2x17x32xf32> to vector<1x16x32xf32>
    %12 = vector.shape_cast %11 : vector<1x16x32xf32> to vector<16x32xf32>
    %cst_9 = arith.constant dense<0.000000e+00> : vector<8x32xf32>
    %13 = tpu.matmul %9, %12, %cst_9 {dimension_numbers = #tpu.dot_dimension_numbers<[1], [0], [0], [1], [0, 0, 1, 1], [], []>} : vector<8x16xf32>, vector<16x32xf32>, vector<8x32xf32> -> vector<8x32xf32>
    %14 = vector.extract_strided_slice %1 {offsets = [0, 16, 0], sizes = [1, 1, 32], strides = [1, 1, 1]} : vector<2x17x32xf32> to vector<1x1x32xf32>
    %15 = vector.shape_cast %14 : vector<1x1x32xf32> to vector<1x32xf32>
    %16 = vector.broadcast %15 : vector<1x32xf32> to vector<8x32xf32>
    %17 = arith.addf %13, %16 : vector<8x32xf32>
    %c0_10 = arith.constant 0 : index
    %c0_11 = arith.constant 0 : index
    %18 = vector.load %arg4[%c0_10, %c0_11] : memref<8x32xf32, #tpu.memory_space<vmem>>, vector<8x32xf32>
    tpu.vector_store %arg4[%c0_10, %c0_11], %17 {strides = array<i32>} : memref<8x32xf32, #tpu.memory_space<vmem>>, vector<8x32xf32>,
    %c0_12 = arith.constant 0 : index
    %c0_13 = arith.constant 0 : index
    %19 = vector.load %arg1[%c0_12, %c0_13] : memref<8x32xf32, #tpu.memory_space<vmem>>, vector<8x32xf32>
    %20 = vector.extract_strided_slice %0 {offsets = [1, 0, 0], sizes = [1, 32, 16], strides = [1, 1, 1]} : vector<2x33x16xf32> to vector<1x32x16xf32>
    %21 = vector.shape_cast %20 : vector<1x32x16xf32> to vector<32x16xf32>
    %cst_14 = arith.constant dense<0.000000e+00> : vector<8x16xf32>
    %22 = tpu.matmul %19, %21, %cst_14 {dimension_numbers = #tpu.dot_dimension_numbers<[1], [0], [0], [1], [0, 0, 1, 1], [], []>} : vector<8x32xf32>, vector<32x16xf32>, vector<8x16xf32> -> vector<8x16xf32>
    %23 = vector.extract_strided_slice %0 {offsets = [1, 32, 0], sizes = [1, 1, 16], strides = [1, 1, 1]} : vector<2x33x16xf32> to vector<1x1x16xf32>
    %24 = vector.shape_cast %23 : vector<1x1x16xf32> to vector<1x16xf32>
    %25 = vector.broadcast %24 : vector<1x16xf32> to vector<8x16xf32>
    %26 = arith.addf %22, %25 : vector<8x16xf32>
    %c0_15 = arith.constant 0 : index
    %c0_16 = arith.constant 0 : index
    %27 = vector.load %arg7[%c0_15, %c0_16] : memref<8x16xf32, #tpu.memory_space<vmem>>, vector<8x16xf32>
    tpu.vector_store %arg7[%c0_15, %c0_16], %26 {strides = array<i32>} : memref<8x16xf32, #tpu.memory_space<vmem>>, vector<8x16xf32>,
    %28 = vector.extract_strided_slice %1 {offsets = [1, 0, 0], sizes = [1, 16, 32], strides = [1, 1, 1]} : vector<2x17x32xf32> to vector<1x16x32xf32>
    %29 = vector.shape_cast %28 : vector<1x16x32xf32> to vector<16x32xf32>
    %cst_17 = arith.constant dense<0.000000e+00> : vector<8x32xf32>
    %30 = tpu.matmul %26, %29, %cst_17 {dimension_numbers = #tpu.dot_dimension_numbers<[1], [0], [0], [1], [0, 0, 1, 1], [], []>} : vector<8x16xf32>, vector<16x32xf32>, vector<8x32xf32> -> vector<8x32xf32>
    %31 = vector.extract_strided_slice %1 {offsets = [1, 16, 0], sizes = [1, 1, 32], strides = [1, 1, 1]} : vector<2x17x32xf32> to vector<1x1x32xf32>
    %32 = vector.shape_cast %31 : vector<1x1x32xf32> to vector<1x32xf32>
    %33 = vector.broadcast %32 : vector<1x32xf32> to vector<8x32xf32>
    %34 = arith.addf %30, %33 : vector<8x32xf32>
    %c0_18 = arith.constant 0 : index
    %c0_19 = arith.constant 0 : index
    %35 = vector.load %arg5[%c0_18, %c0_19] : memref<8x32xf32, #tpu.memory_space<vmem>>, vector<8x32xf32>
    tpu.vector_store %arg5[%c0_18, %c0_19], %34 {strides = array<i32>} : memref<8x32xf32, #tpu.memory_space<vmem>>, vector<8x32xf32>,
    return
  }
}

</mosaic_0001>

<bundles_post_ra>
// kernel: vae_forward.1
= control target key start
LH: loop header
LB: loop body
LE: loop exit
PB: predicated region body
PF: predicated region fallthrough
CT: control target
= control target key end

     0   :  { %13 = vsyncpa [#allocation3], 0  ;;  %s687_s0 = inlined_call_operand.vmem [shape: f32[8,32], index: 0, kind: input, shape index: {}]   ;;  %s688_s1 = inlined_call_operand.vmem [shape: f32[8,32], index: 1, kind: input, shape index: {}]   ;;  %s689_s2 = inlined_call_operand.vmem [shape: f32[2,33,16], index: 2, kind: input, shape index: {}]   ;;  %s690_s3 = inlined_call_operand.vmem [shape: f32[2,17,32], index: 3, kind: input, shape index: {}]   ;;  %s691_s4 = inlined_call_operand.hbm [shape: f32[8,32], index: 4, kind: output, shape index: {0}]   ;;  %s692_s5 = inlined_call_operand.hbm [shape: f32[8,32], index: 5, kind: output, shape index: {1}]   ;;  %s693_s6 = inlined_call_operand.hbm [shape: f32[8,16], index: 6, kind: output, shape index: {2}]   ;;  %s694_s7 = inlined_call_operand.hbm [shape: f32[8,16], index: 7, kind: output, shape index: {3}]  }
   0x1   :  { %14 = vsyncpa [#allocation5], 0  ;;  %v27_v0 = vld [vmem:[%s689_s2 + $0x18] sm:$0xff]  ;;  %v563_v1 = vmov 0.0   ;;  %v26_v2 = vld [vmem:[%s689_s2 + $0x10] sm:$0xff]  ;;  %vm564_vm0 = vmmov 0  }
   0x2   :  { %435 = vmatprep.subr.mxu0 %v563_v1  ;;  %443 = vmatprep.mubr.msk.f32.mxu0 %vm564_vm0, %v563_v1  ;;  %v35_v3 = vld [vmem:[%s690_s3 + $0x8] sm:$0xff] }
   0x3   :  { %436 = vmatpush3.msra.mxu0 %v27_v0  ;;  %446 = vmatprep.subr.mxu1 %v563_v1 }
   0x4   :  { %15 = vsyncpa [#allocation8], 0  ;;  %437 = vmatprep.subr.mxu0 %v563_v1  ;;  %v25_v4 = vld [vmem:[%s689_s2 + $0x8] sm:$0xff]  ;;  %447 = vmatpush3.msra.mxu1 %v35_v3  ;;  %v24_v5 = vld [vmem:[%s689_s2] sm:$0xff]  ;;  %vm45_vm1 = vcmask 261120   ;;  %vm119_vm2 = vcmask 130048  }
   0x5   :  { %438 = vmatpush3.msra.mxu0 %v26_v2  ;;  %448 = vmatprep.subr.mxu1 %v563_v1  ;;  %v40_v6 = vld [vmem:[%s687_s0] sm:$0xff]  ;;  %v31_v13 = vld [vmem:[%s689_s2 + $0x38] sm:$0xff]  ;;  %v30_v14 = vld [vmem:[%s689_s2 + $0x30] sm:$0xff]  ;;  %s565_s10 = smov [#allocation2]  }
   0x6   :  { %439 = vmatprep.subr.mxu0 %v563_v1  ;;  %450 = vmatprep.mubr.msk.f32.mxu1 %vm564_vm0, %v563_v1  ;;  %v34_v7 = vld [vmem:[%s690_s3] sm:$0xff]  ;;  %v29_v15 = vld [vmem:[%s689_s2 + $0x28] sm:$0xff]  ;;  %v37_v18 = vld [vmem:[%s690_s3 + $0x18] sm:$0xff]  ;;  %s362_s11 = sshll.u32 %s565_s10, 4  ;;  %s363_s11 = int_to_ptr.vmem [resolvable:$true] %s362_s11 }
   0x7   :  { %440 = vmatpush3.msra.mxu0 %v25_v4  ;;  %449 = vmatpush3.msra.mxu1 %v34_v7  ;;  %v411_v8 = vld [vmem:[%s689_s2 + $0x20] ss:$0 sm:$0xff]  ;;  %v413_v19 = vld [vmem:[%s690_s3 + $0x10] ss:$0 sm:$0xff]  ;;  %v415_v23 = vld [vmem:[%s689_s2 + $0x48] ss:$0 sm:$0xff]  ;;  %p482_p1 = scmp.lt.s32.totalorder %s363_s11, %s363_s11 }
   0x8   :  { %441 = vmatprep.subr.mxu0 %v563_v1  ;;  %453 = vmatprep.subr.mxu1 %v563_v1  ;;  %v32_v11 = vld [vmem:[%s689_s2 + $0x40] sm:$0xff]  ;;  %s477_s12 = scalar_lea.vmem %s363_s11, 128 }
   0x9   :  { %442 = vmatpush3.msra.mxu0 %v24_v5  ;;  %v199_v16 = vld [vmem:[%s688_s1] sm:$0xff]  ;;  %p478_p0 = scmp.ne.s32.totalorder %s363_s11, %s477_s12  ;;  %p483_p2 = scmp.lt.s32.totalorder %s477_s12, %s477_s12 }
   0xa   :  { %444 = vmatmul.mubr.msk.f32.vlgmr.msra.gmra.mxu0 %vm45_vm1, %v40_v6  ;;  %464 = vmatprep.subr.mxu0 %v563_v1  ;;  %v38_v17 = vld [vmem:[%s690_s3 + $0x20] sm:$0xff] }
   0xb   :  { %468 = vmatprep.mubr.msk.f32.mxu0 %vm564_vm0, %v563_v1  ;;  %465 = vmatpush3.msra.mxu0 %v38_v17  ;;  %p484_p3 = por %p483_p2, %p482_p1 }
   0xc   :  { %466 = vmatprep.subr.mxu0 %v563_v1 }
   0xd   :  { %467 = vmatpush3.msra.mxu0 %v37_v18  ;;  %p485_p4 = pnand %p484_p3, %p478_p0 }
  0xca   :  { %v115_v9 = vpop.f32.mrf.mxu0 }
  0xcb   :  { %v116_v10 = vadd.f32 %v411_v8, %v115_v9 }
  0xcc   :  { %v445_v12 = vpop.f32.mrf.mxu0 }
  0xcd   :  { %451 = vmatmul.mubr.msk.f32.vlgmr.msra.gmra.mxu1 %vm119_vm2, %v116_v10  ;;  %120 = vst.msk [vmem:[#allocation6] sm:$0xff] %vm119_vm2, %v116_v10 }
  0xce   :  { %454 = vmatpush3.msra.mxu1 %v32_v11  ;;  %461 = vmatprep.mubr.msk.f32.mxu1 %vm564_vm0, %v563_v1 }
  0xcf   :  { %455 = vmatprep.subr.mxu1 %v563_v1 }
  0xd0   :  { %456 = vmatpush3.msra.mxu1 %v31_v13 }
  0xd1   :  { %457 = vmatprep.subr.mxu1 %v563_v1 }
  0xd2   :  { %458 = vmatpush3.msra.mxu1 %v30_v14 }
  0xd3   :  { %459 = vmatprep.subr.mxu1 %v563_v1 }
  0xd4   :  { %460 = vmatpush3.msra.mxu1 %v29_v15 }
  0xd5   :  { %462 = vmatmul.mubr.msk.f32.vlgmr.msra.gmra.mxu1 %vm45_vm1, %v199_v16 }
 0x18d   :  { %v194_v20 = vpop.f32.mrf.mxu1 }
 0x18e   :  { %v195_v21 = vadd.f32 %v413_v19, %v194_v20 }
 0x18f   :  { %v452_v22 = vpop.f32.mrf.mxu1 }
 0x190   :  { %198 = vst.msk [vmem:[#allocation2] sm:$0xff] %vm45_vm1, %v195_v21 }
 0x195   :  { %v273_v24 = vpop.f32.mrf.mxu1 }
 0x196   :  { %v274_v25 = vadd.f32 %v415_v23, %v273_v24 }
 0x197   :  { %v463_v26 = vpop.f32.mrf.mxu1 }
 0x198   :  { %277 = vst.msk [vmem:[#allocation7] sm:$0xff] %vm119_vm2, %v274_v25  ;;  %469 = vmatmul.mubr.msk.f32.vlgmr.msra.gmra.mxu0 %vm119_vm2, %v274_v25 }
 0x199   :  { %488 = shalt.err (!%p485_p4)
}
 0x19a   :  { %365 = dma.vmem_to_hbm [thread:$0]  %s363_s11, 128, %s691_s4, [#allocation3]  }
 0x19b   :  { %s566_s2 = smov [#allocation7]  }
 0x19c   :  { %s392_s15 = sshll.u32 %s566_s2, 4  ;;  %s393_s15 = int_to_ptr.vmem [resolvable:$true] %s392_s15 }
 0x19d   :  { %s497_s16 = scalar_lea.vmem %s393_s15, 128  ;;  %p502_p6 = scmp.lt.s32.totalorder %s393_s15, %s393_s15 }
 0x19e   :  { %p498_p5 = scmp.ne.s32.totalorder %s393_s15, %s497_s16  ;;  %p503_p7 = scmp.lt.s32.totalorder %s497_s16, %s497_s16 }
 0x1a0   :  { %p504_p8 = por %p503_p7, %p502_p6 }
 0x1a2   :  { %p505_p9 = pnand %p504_p8, %p498_p5 }
 0x1a4   :  { %508 = shalt.err (!%p505_p9)
}
 0x1a5   :  { %395 = dma.vmem_to_hbm [thread:$0]  %s393_s15, 128, %s694_s7, [#allocation8]   ;;  %v417_v27 = vld [vmem:[%s690_s3 + $0x28] ss:$0 sm:$0xff] }
 0x1a6   :  { %s567_s20 = smov [#allocation4]   ;;  %s568_s21 = smov [#allocation6]  }
 0x1a7   :  { %s372_s4 = sshll.u32 %s567_s20, 4  ;;  %s382_s22 = sshll.u32 %s568_s21, 4  ;;  %s373_s4 = int_to_ptr.vmem [resolvable:$true] %s372_s4  ;;  %s383_s22 = int_to_ptr.vmem [resolvable:$true] %s382_s22 }
 0x1a8   :  { %s517_s23 = scalar_lea.vmem %s373_s4, 128  ;;  %p522_p11 = scmp.lt.s32.totalorder %s373_s4, %s373_s4 }
 0x1a9   :  { %p518_p10 = scmp.ne.s32.totalorder %s373_s4, %s517_s23  ;;  %p523_p12 = scmp.lt.s32.totalorder %s517_s23, %s517_s23 }
 0x1ab   :  { %p524_p13 = por %p523_p12, %p522_p11 }
 0x1ad   :  { %p525_p0 = pnand %p524_p13, %p518_p10 }
 0x258   :  { %v351_v28 = vpop.f32.mrf.mxu0 }
 0x259   :  { %v352_v29 = vadd.f32 %v417_v27, %v351_v28 }
 0x25a   :  { %v470_v30 = vpop.f32.mrf.mxu0 }
 0x25b   :  { %355 = vst.msk [vmem:[#allocation4] sm:$0xff] %vm45_vm1, %v352_v29 }
 0x25c   :  { %528 = shalt.err (!%p525_p0)
}
 0x25d   :  { %375 = dma.vmem_to_hbm [thread:$0]  %s373_s4, 128, %s692_s5, [#allocation5]  }
 0x25e   :  { %s537_s24 = scalar_lea.vmem %s383_s22, 128  ;;  %p542_p2 = scmp.lt.s32.totalorder %s383_s22, %s383_s22 }
 0x25f   :  { %p538_p1 = scmp.ne.s32.totalorder %s383_s22, %s537_s24  ;;  %p543_p3 = scmp.lt.s32.totalorder %s537_s24, %s537_s24 }
 0x261   :  { %p544_p4 = por %p543_p3, %p542_p2 }
 0x263   :  { %p545_p5 = pnand %p544_p4, %p538_p1 }
 0x265   :  { %548 = shalt.err (!%p545_p5)
}
 0x266   :  { %385 = dma.vmem_to_hbm [thread:$0]  %s383_s22, 128, %s693_s6, [#allocation5]  }
 0x267   :  { %557 = dma.done.wait [#allocation3], 128  }
 0x268   :  { %558 = vsyncadd [#allocation3], 4294967168 }
 0x269   :  { %559 = dma.done.wait [#allocation5], 256  }
 0x26a   :  { %560 = vsyncadd [#allocation5], 4294967040 }
 0x26b   :  { %561 = dma.done.wait [#allocation8], 128  }
 0x26c   :  { %562 = vsyncadd [#allocation8], 4294967168 }
 0x26d   :  { %408 = vsyncpa [#allocation3], 1 }
 0x26e   :  { %409 = vsyncpa [#allocation5], 1 }
 0x26f   :  { %410 = vsyncpa [#allocation8], 1 }

</bundles_post_ra>
